<compile_context>
chip_gen: v6e
topology: v6e:2x2x1
jax: 0.10.0
libtpu: 0.0.40
codegen_flags: <defaults>
</compile_context>

<pallas_src>
import functools
import math

import jax
import jax.numpy as jnp
from jax.experimental import pallas as pl
from jax.experimental.pallas import tpu as pltpu

_LANE = 128


# ---------------------------------------------------------------------------
# small helpers
# ---------------------------------------------------------------------------
def _sublane_align(dtype):
    # 8 rows for 32-bit, 16 for bf16/f16, 32 for int8/fp8 (packed sublanes).
    return max(8, 32 // jnp.dtype(dtype).itemsize)


def _dtype_min(dtype):
    dtype = jnp.dtype(dtype)
    if dtype == jnp.bool_:
        return False
    if jnp.issubdtype(dtype, jnp.floating):
        return float("-inf")
    return int(jnp.iinfo(dtype).min)


def _vmem_limit_bytes():
    # ~0.8 of physical VMEM (v7x: 64 MiB -> ~51 MiB, v5e/v6e: capped at 100 MiB).
    try:
        cap = pltpu.get_tpu_info().vmem_capacity_bytes
        return int(min(100 * 2**20, cap * 0.8))
    except Exception:
        return 64 * 2**20


def _default_block_bytes():
    # Per-input-block byte budget: a quarter of the scoped VMEM limit, capped at
    # 16 MiB (double-buffered inputs + temps always fit comfortably).
    return int(min(16 * 2**20, _vmem_limit_bytes() // 4))


def _block_dim(n, target, align=1):
    """Block size for a dim of length n: full dim if it fits `target`,
    otherwise the largest multiple of `align` <= target (at least `align`)."""
    if n <= target:
        return n  # full dim is always layout-legal
    b = (target // align) * align
    if b >= align:
        return b
    return min(align, n)


def _split_for_cores(n, b, align):
    """If a dim currently forms a single block, split it into >=2 blocks so the
    'parallel' grid axis can be sharded across both v7x TensorCores."""
    if n >= 2 * align and b >= n:
        half = -(-n // 2)
        return -(-half // align) * align
    return b


# ---------------------------------------------------------------------------
# in-kernel building blocks
# ---------------------------------------------------------------------------
def _fold_lane_chunks(acc_ref, x_ref, *, init, row_start=None, n_rows=None,
                      col_start=None, n_cols=None):
    """Running elementwise max of a (bm, bn) input block into a narrow
    (bm, 128) VMEM accumulator, 128 lanes at a time (pure VPU work).  Optional
    row/col masking is applied per 128-wide slice so temporaries stay tiny."""
    bm, bn = x_ref.shape
    for off in range(0, bn, _LANE):
        w = min(_LANE, bn - off)
        piece = x_ref[:, off:off + w]
        ok = None
        if row_start is not None:
            r = row_start + jax.lax.broadcasted_iota(jnp.int32, (bm, w), 0)
            ok = r < n_rows
        if col_start is not None:
            c = col_start + off + jax.lax.broadcasted_iota(jnp.int32, (bm, w), 1)
            cm = c < n_cols
            ok = cm if ok is None else (ok & cm)
        if ok is not None:
            piece = jnp.where(ok, piece, jnp.asarray(init, dtype=piece.dtype))
        acc_ref[:, :w] = jnp.maximum(acc_ref[:, :w], piece)


# ---------------------------------------------------------------------------
# kernels
# ---------------------------------------------------------------------------
def _max_mid_kernel(x_ref, o_ref, *, init, r_total, br, mask_r):
    """Reduce axis 1 of a (bp, br, bq) block; the resident (bp, 1, bq) output
    block is the running-max accumulator across the trailing grid axis."""
    k = pl.program_id(2)

    @pl.when(k == 0)
    def _():
        o_ref[...] = jnp.full(o_ref.shape, init, o_ref.dtype)

    if mask_r:  # ragged tail of the reduced axis -> replace OOB rows by identity
        rows = k * br + jax.lax.broadcasted_iota(jnp.int32, x_ref.shape, 1)
        x = jnp.where(rows < r_total, x_ref[...], jnp.asarray(init, dtype=x_ref.dtype))
    else:
        x = x_ref[...]
    o_ref[...] = jnp.maximum(o_ref[...], jnp.max(x, axis=1, keepdims=True))


def _max_last_single_kernel(x_ref, o_ref):
    """Whole reduced axis fits in one block: single pass, one cross-lane reduce
    per output block, no scratch accumulator."""
    o_ref[...] = jnp.max(x_ref[...], axis=-1, keepdims=True)


def _max_last_kernel(x_ref, o_ref, acc_ref, *, init, r_total, bk, mask_r):
    """Reduce the lane axis in bk-wide chunks: VPU running max into a narrow
    (bm, 128) accumulator, single XLU cross-lane reduce at the final step."""
    k = pl.program_id(1)

    @pl.when(k == 0)
    def _():
        acc_ref[...] = jnp.full(acc_ref.shape, init, acc_ref.dtype)

    _fold_lane_chunks(acc_ref, x_ref, init=init,
                      col_start=(k * bk) if mask_r else None, n_cols=r_total)

    @pl.when(k == pl.num_programs(1) - 1)
    def _():
        o_ref[...] = jnp.max(acc_ref[...], axis=-1, keepdims=True)


def _max_global_kernel(x_ref, o_ref, acc_ref, *, init, n_rows, n_cols, bm, bn,
                       mask_rows, mask_cols):
    """Per row-block partial global max: fold (bm, bn) column chunks into a
    (bm, 128) accumulator; one full reduce to a scalar partial at the end."""
    i = pl.program_id(0)
    k = pl.program_id(1)

    @pl.when(k == 0)
    def _():
        acc_ref[...] = jnp.full(acc_ref.shape, init, acc_ref.dtype)

    _fold_lane_chunks(acc_ref, x_ref, init=init,
                      row_start=(i * bm) if mask_rows else None, n_rows=n_rows,
                      col_start=(k * bn) if mask_cols else None, n_cols=n_cols)

    @pl.when(k == pl.num_programs(1) - 1)
    def _():
        o_ref[0, 0, 0] = jnp.max(acc_ref[...])


# ---------------------------------------------------------------------------
# pallas_call wrappers
# ---------------------------------------------------------------------------
def _pallas_max_mid(x3, init, block_bytes):
    """x3: (pre, R, post), reduce axis 1, returns (pre, 1, post)."""
    pre, R, post = x3.shape
    dtype = x3.dtype
    itemsize = jnp.dtype(dtype).itemsize
    sub = _sublane_align(dtype)

    def pick(bb):
        budget = max(bb // itemsize, sub * _LANE)
        bq = _block_dim(post, max(_LANE, budget // sub), _LANE)   # lanes: widen first
        br = _block_dim(R, max(sub, budget // bq), sub)           # reduced (sublanes)
        bp = max(1, min(pre, budget // (br * bq)))                # leading dim
        return bp, br, bq

    spec_kwargs = {}
    bb = block_bytes
    bp, br, bq = pick(bb)
    if bq < post and hasattr(pl, "Buffered"):
        # Strided row reads from HBM: deepen input buffering; shrink blocks so
        # three buffers cost about the same VMEM as two full-size ones.
        bb = max((bb * 2) // 3, sub * _LANE * itemsize)
        bp, br, bq = pick(bb)
        spec_kwargs["pipeline_mode"] = pl.Buffered(3)
    if R % br != 0:
        # Ragged reduced axis -> in-kernel masking needs a block-sized temp;
        # halve the block budget so everything stays well inside VMEM.
        bb = max(bb // 2, sub * _LANE * itemsize)
        bp, br, bq = pick(bb)
    mask_r = (R % br) != 0

    grid = (pl.cdiv(pre, bp), pl.cdiv(post, bq), pl.cdiv(R, br))
    kernel = functools.partial(_max_mid_kernel, init=init, r_total=R, br=br,
                               mask_r=mask_r)
    return pl.pallas_call(
        kernel,
        out_shape=jax.ShapeDtypeStruct((pre, 1, post), dtype),
        grid=grid,
        in_specs=[pl.BlockSpec((bp, br, bq), lambda i, j, k: (i, k, j), **spec_kwargs)],
        out_specs=pl.BlockSpec((bp, 1, bq), lambda i, j, k: (i, 0, j)),
        compiler_params=pltpu.CompilerParams(
            dimension_semantics=("parallel", "parallel", "arbitrary"),
            vmem_limit_bytes=_vmem_limit_bytes(),
        ),
        cost_estimate=pl.CostEstimate(
            flops=pre * R * post, transcendentals=0,
            bytes_accessed=(pre * R * post + pre * post) * itemsize,
        ),
    )(x3)


def _pallas_max_last(x2, init, block_bytes):
    """x2: (pre, R), reduce the last (lane) axis, returns (pre, 1)."""
    pre, R = x2.shape
    dtype = x2.dtype
    itemsize = jnp.dtype(dtype).itemsize
    sub = _sublane_align(dtype)
    budget = max(block_bytes // itemsize, sub * _LANE)
    vmem_limit = _vmem_limit_bytes()
    cost = pl.CostEstimate(flops=pre * R, transcendentals=0,
                           bytes_accessed=(pre * R + pre) * itemsize)

    if R <= budget // sub:
        # Whole reduced axis fits in one block: single pass, no accumulator.
        bm = _block_dim(pre, max(sub, budget // max(R, 1)), sub)
        bm = _split_for_cores(pre, bm, sub)   # keep both v7x cores busy
        return pl.pallas_call(
            _max_last_single_kernel,
            out_shape=jax.ShapeDtypeStruct((pre, 1), dtype),
            grid=(pl.cdiv(pre, bm),),
            in_specs=[pl.BlockSpec((bm, R), lambda i: (i, 0))],
            out_specs=pl.BlockSpec((bm, 1), lambda i: (i, 0)),
            compiler_params=pltpu.CompilerParams(
                dimension_semantics=("parallel",), vmem_limit_bytes=vmem_limit),
            cost_estimate=cost,
        )(x2)

    # R is very wide: chunk the lane axis, keep a narrow (bm, 128) running max.
    bk = _block_dim(R, max(_LANE, min(8192, budget // sub)), _LANE)
    bm = _block_dim(pre, max(sub, budget // bk), sub)
    grid = (pl.cdiv(pre, bm), pl.cdiv(R, bk))
    kernel = functools.partial(_max_last_kernel, init=init, r_total=R, bk=bk,
                               mask_r=(R % bk != 0))
    return pl.pallas_call(
        kernel,
        out_shape=jax.ShapeDtypeStruct((pre, 1), dtype),
        grid=grid,
        in_specs=[pl.BlockSpec((bm, bk), lambda i, k: (i, k))],
        out_specs=pl.BlockSpec((bm, 1), lambda i, k: (i, 0)),
        scratch_shapes=[pltpu.VMEM((bm, _LANE), dtype)],
        compiler_params=pltpu.CompilerParams(
            dimension_semantics=("parallel", "arbitrary"),
            vmem_limit_bytes=vmem_limit),
        cost_estimate=cost,
    )(x2)


def _pallas_max_global(x, init, block_bytes):
    """Global max over all elements (torch's x.max()), returns a 0-D array."""
    dtype = x.dtype
    itemsize = jnp.dtype(dtype).itemsize
    sub = _sublane_align(dtype)
    budget = max(block_bytes // itemsize, sub * _LANE)

    # Collapse leading dims (free reshape — the last dim is preserved). No pad.
    x2 = x.reshape(-1, x.shape[-1]) if x.ndim > 1 else x.reshape(1, -1)
    M, N = x2.shape

    bn = _block_dim(N, max(_LANE, budget // sub), _LANE)
    bm = _block_dim(M, max(sub, budget // bn), sub)
    bm = _split_for_cores(M, bm, sub)        # >=2 row blocks -> both v7x cores
    row_blocks = pl.cdiv(M, bm)
    col_blocks = pl.cdiv(N, bn)

    kernel = functools.partial(
        _max_global_kernel, init=init, n_rows=M, n_cols=N, bm=bm, bn=bn,
        mask_rows=(M % bm != 0), mask_cols=(N % bn != 0))

    partials = pl.pallas_call(
        kernel,
        out_shape=jax.ShapeDtypeStruct((row_blocks, 1, 1), dtype),
        grid=(row_blocks, col_blocks),
        in_specs=[pl.BlockSpec((bm, bn), lambda i, k: (i, k))],
        out_specs=pl.BlockSpec((1, 1, 1), lambda i, k: (i, 0, 0)),
        scratch_shapes=[pltpu.VMEM((bm, _LANE), dtype)],
        compiler_params=pltpu.CompilerParams(
            dimension_semantics=("parallel", "arbitrary"),
            vmem_limit_bytes=_vmem_limit_bytes()),
        cost_estimate=pl.CostEstimate(
            flops=M * N, transcendentals=0,
            bytes_accessed=(M * N + row_blocks) * itemsize),
    )(x2)
    # Tiny fold of the per-row-block partial maxima (a few scalars).
    return jnp.max(partials).reshape(())


# ---------------------------------------------------------------------------
# public wrapper (== Max(dim, keepdim).forward)
# ---------------------------------------------------------------------------
def pallas_max(x, dim=None, keepdim=False, *, block_bytes=None):
    """JAX/Pallas equivalent of synthcity's Max(dim, keepdim): torch.max(x, dim)[0]."""
    x = jnp.asarray(x)
    bb = block_bytes if block_bytes else _default_block_bytes()

    # torch.max supports bool; route through int32 (max == logical or), cast back.
    if x.dtype == jnp.bool_:
        return pallas_max(x.astype(jnp.int32), dim, keepdim,
                          block_bytes=bb).astype(jnp.bool_)

    if x.ndim == 0:
        return x

    init = _dtype_min(x.dtype)

    if dim is None:
        # torch semantics: x.max() -> global scalar max (keepdim ignored).
        return _pallas_max_global(x, init, bb)

    axis = dim % x.ndim
    shape = x.shape
    pre = math.prod(shape[:axis])
    R = shape[axis]
    post = math.prod(shape[axis + 1:])

    if keepdim:
        final_shape = shape[:axis] + (1,) + shape[axis + 1:]
    else:
        final_shape = shape[:axis] + shape[axis + 1:]

    if post == 1:
        out = _pallas_max_last(x.reshape(pre, R), init, bb)        # (pre, 1)
    else:
        out = _pallas_max_mid(x.reshape(pre, R, post), init, bb)   # (pre, 1, post)
    return out.reshape(final_shape)


# ---------------------------------------------------------------------------
# self-test
# ---------------------------------------------------------------------------
if __name__ == "__main__":
    key = jax.random.PRNGKey(0)
    B, S, H = 2, 8, 32
    x = jax.random.normal(key, (B, S, H), dtype=jnp.float32)

    def check(out, ref, name):
        out = jax.block_until_ready(out)
        assert out.shape == ref.shape and out.dtype == ref.dtype, (
            name, out.shape, ref.shape, out.dtype, ref.dtype)
        assert jnp.array_equal(out, ref), f"mismatch: {name}"

    # Max(dim=1): pool over the sequence axis
    check(pallas_max(x, dim=1), jnp.max(x, axis=1), "dim=1")
    # last-axis reduction with keepdim
    check(pallas_max(x, dim=2, keepdim=True), jnp.max(x, axis=2, keepdims=True),
          "dim=2 keepdim")
    # leading / negative axis
    check(pallas_max(x, dim=-3), jnp.max(x, axis=0), "dim=0")
    # global max (dim=None)
    check(pallas_max(x), jnp.max(x), "global")

    # other dtypes
    xb16 = x.astype(jnp.bfloat16)
    check(pallas_max(xb16, dim=1), jnp.max(xb16, axis=1), "bf16 dim=1")
    xi = jax.random.randint(jax.random.PRNGKey(3), (B, S, H), -1000, 1000,
                            dtype=jnp.int32)
    check(pallas_max(xi, dim=2), jnp.max(xi, axis=2), "int32 dim=2")
    xbool = x > 0.0
    check(pallas_max(xbool, dim=1), jnp.max(xbool, axis=1), "bool dim=1")

    # larger shapes exercising the default (per-generation) tiling
    xl = jax.random.normal(jax.random.PRNGKey(1), (2, 2048, 1024), dtype=jnp.float32)
    check(pallas_max(xl, dim=1), jnp.max(xl, axis=1), "tiled mid")
    check(pallas_max(xl, dim=-1), jnp.max(xl, axis=-1), "tiled last")
    check(pallas_max(xl), jnp.max(xl), "tiled global")

    # ragged / multi-step paths: shrink the block budget so the masked
    # reduction tails and narrow running-max accumulators run at small sizes
    xr = jax.random.normal(jax.random.PRNGKey(2), (2, 300, 256), dtype=jnp.float32)
    check(pallas_max(xr, dim=1, block_bytes=64 * 1024), jnp.max(xr, axis=1),
          "masked mid")
    xs = jax.random.normal(jax.random.PRNGKey(4), (20, 1000), dtype=jnp.float32)
    check(pallas_max(xs, dim=-1, block_bytes=8 * 1024), jnp.max(xs, axis=-1),
          "masked last")
    xg = jax.random.normal(jax.random.PRNGKey(5), (4, 5, 300), dtype=jnp.float32)
    check(pallas_max(xg, block_bytes=4 * 1024), jnp.max(xg), "masked global")

    print("KERNEL_OK")
</pallas_src>

<mosaic_0001>
module attributes {stable_mosaic.version = 11 : i64} {
  func.func @_max_mid_kernel(%arg0: i32, %arg1: i32, %arg2: i32, %arg3: memref<2x8x32xf32, #tpu.memory_space<vmem>>, %arg4: memref<2x1x32xf32, #tpu.memory_space<vmem>>) attributes {dimension_semantics = [#tpu.dimension_semantics<parallel>, #tpu.dimension_semantics<parallel>, #tpu.dimension_semantics<arbitrary>], iteration_bounds = array<i64: 1, 1, 1>, scalar_prefetch = 0 : i64, scratch_operands = 0 : i64, tpu.core_type = #tpu.core_type<tc>, window_params = [{transform_indices = @transform_0, window_bounds = array<i64: 2, 8, 32>}, {transform_indices = @transform_1, window_bounds = array<i64: 2, 1, 32>}]} {
    %c0_i32 = arith.constant 0 : i32
    %0 = arith.cmpi eq, %arg2, %c0_i32 : i32
    %1 = arith.extui %0 : i1 to i32
    %c0_i32_0 = arith.constant 0 : i32
    %2 = arith.cmpi ne, %1, %c0_i32_0 : i32
    scf.if %2 {
      %cst_9 = arith.constant 0xFF800000 : f32
      %9 = vector.broadcast %cst_9 : f32 to vector<2x1x32xf32>
      %c0_10 = arith.constant 0 : index
      %c0_11 = arith.constant 0 : index
      %c0_12 = arith.constant 0 : index
      %10 = vector.load %arg4[%c0_10, %c0_11, %c0_12] : memref<2x1x32xf32, #tpu.memory_space<vmem>>, vector<2x1x32xf32>
      tpu.vector_store %arg4[%c0_10, %c0_11, %c0_12], %9 {strides = array<i32>} : memref<2x1x32xf32, #tpu.memory_space<vmem>>, vector<2x1x32xf32>,
    } else {
    }
    %c0 = arith.constant 0 : index
    %c0_1 = arith.constant 0 : index
    %c0_2 = arith.constant 0 : index
    %3 = vector.load %arg3[%c0, %c0_1, %c0_2] : memref<2x8x32xf32, #tpu.memory_space<vmem>>, vector<2x8x32xf32>
    %c0_3 = arith.constant 0 : index
    %c0_4 = arith.constant 0 : index
    %c0_5 = arith.constant 0 : index
    %4 = vector.load %arg4[%c0_3, %c0_4, %c0_5] : memref<2x1x32xf32, #tpu.memory_space<vmem>>, vector<2x1x32xf32>
    %cst = arith.constant dense<0xFF800000> : vector<2x32xf32>
    %5 = vector.multi_reduction <maximumf>, %3, %cst [1] : vector<2x8x32xf32> to vector<2x32xf32>
    %6 = vector.shape_cast %5 : vector<2x32xf32> to vector<2x1x32xf32>
    %7 = arith.maximumf %4, %6 : vector<2x1x32xf32>
    %c0_6 = arith.constant 0 : index
    %c0_7 = arith.constant 0 : index
    %c0_8 = arith.constant 0 : index
    %8 = vector.load %arg4[%c0_6, %c0_7, %c0_8] : memref<2x1x32xf32, #tpu.memory_space<vmem>>, vector<2x1x32xf32>
    tpu.vector_store %arg4[%c0_6, %c0_7, %c0_8], %7 {strides = array<i32>} : memref<2x1x32xf32, #tpu.memory_space<vmem>>, vector<2x1x32xf32>,
    return
  }
  func.func @transform_0(%arg0: i32, %arg1: i32, %arg2: i32) -> (i32, i32, i32) {
    %c0_i32 = arith.constant 0 : i32
    return %arg0, %arg2, %arg1 : i32, i32, i32
  }
  func.func @transform_1(%arg0: i32, %arg1: i32, %arg2: i32) -> (i32, i32, i32) {
    %c0_i32 = arith.constant 0 : i32
    %c0_i32_0 = arith.constant 0 : i32
    return %arg0, %c0_i32, %arg1 : i32, i32, i32
  }
}

</mosaic_0001>

<bundles_post_ra>
// kernel: tpu_custom_call.1
= control target key start
LH: loop header
LB: loop body
LE: loop exit
PB: predicated region body
PF: predicated region fallthrough
CT: control target
= control target key end

     0   :  { %6 = vsyncpa [#allocation3], 0  ;;  %s149_s0 = inlined_call_operand.hbm [shape: f32[2,8,32], index: 0, kind: input, shape index: {}]   ;;  %s150_s1 = inlined_call_operand.hbm [shape: f32[2,1,32], index: 1, kind: output, shape index: {}]  }
   0x1   :  { %7 = vsyncpa [#allocation4], 0  ;;  %s122_s6 = smov [#allocation2]  }
   0x2   :  { %s13_s7 = sshll.u32 %s122_s6, 4  ;;  %s14_s7 = int_to_ptr.vmem [resolvable:$true] %s13_s7 }
   0x3   :  { %s86_s8 = scalar_lea.vmem %s14_s7, 256  ;;  %p91_p1 = scmp.lt.s32.totalorder %s14_s7, %s14_s7 }
   0x4   :  { %p87_p0 = scmp.ne.s32.totalorder %s14_s7, %s86_s8  ;;  %p92_p2 = scmp.lt.s32.totalorder %s86_s8, %s86_s8 }
   0x6   :  { %p93_p3 = por %p92_p2, %p91_p1 }
   0x8   :  { %p94_p4 = pnand %p93_p3, %p87_p0 }
   0xa   :  { %97 = shalt.err (!%p94_p4)
}
   0xb   :  { %s123_s9 = smov 128   ;;  %s124_s10 = smov 8  }
   0xc   :  { %19 = dma.hbm_to_vmem [thread:$0]  %s149_s0, 256, %s14_s7, [#allocation3], %s123_s9, %s123_s9, %s124_s10  }
   0xd   :  { %118 = dma.done.wait [#allocation3], 256  }
   0xe   :  { %119 = vsyncadd [#allocation3], 4294967040  ;;  %vm27_vm0 = vcmask 253952   ;;  %v125_v0 = vmov -inf   ;;  %vm34_vm1 = vcmask 261120   ;;  %v30_v1 = vld [vmem:[#allocation2] sm:$0xff] }
   0xf   :  { %28 = vst.msk [vmem:[#allocation5] sm:$0x1] %vm27_vm0, %v125_v0  ;;  %29 = vst.msk [vmem:[#allocation5 + $0x1] sm:$0x1] %vm27_vm0, %v125_v0  ;;  %v31_v2 = vld [vmem:[#allocation2 + $0x8] sm:$0xff]  ;;  %v35_v3 = vsel %vm34_vm1, %v30_v1, -inf }
  0x10   :  { %v42_v4 = vsel %vm34_vm1, %v31_v2, -inf  ;;  %v36_v5 = vrot.slane %v35_v3, 4  ;;  %s126_s0 = smov [#allocation5]  }
  0x11   :  { %v43_v6 = vrot.slane %v42_v4, 4  ;;  %s59_s13 = sshll.u32 %s126_s0, 4  ;;  %s60_s13 = int_to_ptr.vmem [resolvable:$true] %s59_s13 }
  0x12   :  { %v37_v7 = vmax.f32 %v35_v3, %v36_v5  ;;  %s98_s14 = scalar_lea.vmem %s60_s13, 32  ;;  %p103_p6 = scmp.lt.s32.totalorder %s60_s13, %s60_s13 }
  0x13   :  { %v44_v8 = vmax.f32 %v42_v4, %v43_v6  ;;  %p99_p5 = scmp.ne.s32.totalorder %s60_s13, %s98_s14  ;;  %p104_p7 = scmp.lt.s32.totalorder %s98_s14, %s98_s14 }
  0x14   :  { %v38_v9 = vrot.slane %v37_v7, 2 }
  0x15   :  { %v45_v10 = vrot.slane %v44_v8, 2  ;;  %p105_p8 = por %p104_p7, %p103_p6 }
  0x16   :  { %v39_v11 = vmax.f32 %v37_v7, %v38_v9  ;;  %v32_v15 = vld [vmem:[#allocation5] sm:$0x1]  ;;  %v33_v16 = vld [vmem:[#allocation5 + $0x1] sm:$0x1] }
  0x17   :  { %v46_v12 = vmax.f32 %v44_v8, %v45_v10  ;;  %p106_p9 = pnand %p105_p8, %p99_p5 }
  0x18   :  { %v40_v13 = vrot.slane %v39_v11, 1 }
  0x19   :  { %v47_v14 = vrot.slane %v46_v12, 1 }
  0x1a   :  { %v41_v17 = vmax.f32 %v39_v11, %v40_v13 }
  0x1b   :  { %v48_v18 = vmax.f32 %v46_v12, %v47_v14 }
  0x1c   :  { %v49_v19 = vmax.f32 %v32_v15, %v41_v17 }
  0x1d   :  { %v50_v20 = vmax.f32 %v33_v16, %v48_v18 }
  0x1e   :  { %52 = vst.msk [vmem:[#allocation5] sm:$0x1] %vm27_vm0, %v49_v19 }
  0x1f   :  { %53 = vst.msk [vmem:[#allocation5 + $0x1] sm:$0x1] %vm27_vm0, %v50_v20 }
  0x20   :  { %109 = shalt.err (!%p106_p9)
}
  0x21   :  { %s127_s15 = smov 16   ;;  %s128_s16 = smov 1  }
  0x22   :  { %65 = dma.vmem_to_hbm [thread:$0]  %s60_s13, 32, %s150_s1, [#allocation4], %s127_s15, %s127_s15, %s128_s16  }
  0x23   :  { %120 = dma.done.wait [#allocation4], 32  }
  0x24   :  { %121 = vsyncadd [#allocation4], 4294967264 }
  0x25   :  { %69 = vsyncpa [#allocation3], 1 }
  0x26   :  { %70 = vsyncpa [#allocation4], 1 }

</bundles_post_ra>
